<compile_context>
chip_gen: v5e
topology: v5e:2x2
jax: 0.10.0
libtpu: 0.0.40
codegen_flags: <defaults>
</compile_context>

<pallas_src>
import jax
import jax.numpy as jnp
from jax.experimental import pallas as pl
from jax.experimental.pallas import tpu as pltpu


# --------------------------------------------------------------------------
# Pallas kernel: the whole MLP + log_softmax for one row-tile of nodes.
# --------------------------------------------------------------------------
def _make_kernel(n_hidden, num_class):
    """n_hidden = number of Linear(hidden, hidden) layers; num_class = valid logit cols."""

    def kernel(*refs):
        emb_ref, w1_ref, b1_ref = refs[0:3]
        hid_refs = refs[3:3 + 2 * n_hidden]
        wo_ref, bo_ref, out_ref = refs[3 + 2 * n_hidden:]

        # lin1 + ReLU   (dropout p=0.5 is identity in eval mode).
        # Embedding tile streamed as f32, cast to bf16 here for the MXU.
        x = emb_ref[...].astype(jnp.bfloat16)
        h = jnp.dot(x, w1_ref[...],
                    preferred_element_type=jnp.float32) + b1_ref[...]
        h = jnp.maximum(h, 0.0)

        # hidden Linear layers + ReLU
        for l in range(n_hidden):
            w = hid_refs[2 * l]
            b = hid_refs[2 * l + 1]
            h = jnp.dot(h.astype(w.dtype), w[...],
                        preferred_element_type=jnp.float32) + b[...]
            h = jnp.maximum(h, 0.0)

        # out Linear + log_softmax(dim=-1) over the padded 128-lane logits,
        # masking padded class columns with a Python literal (no captured consts).
        logits = jnp.dot(h.astype(wo_ref.dtype), wo_ref[...],
                         preferred_element_type=jnp.float32) + bo_ref[...]
        col = jax.lax.broadcasted_iota(jnp.int32, logits.shape, 1)
        logits = jnp.where(col < num_class, logits, -1e30)

        m = jnp.max(logits, axis=-1, keepdims=True)
        z = logits - m
        lse = jnp.log(jnp.sum(jnp.exp(z), axis=-1, keepdims=True))
        # Store only the valid classes -> narrow (TM, num_class) writeback.
        out_ref[...] = (z - lse)[:, :num_class]

    return kernel


# --------------------------------------------------------------------------
# Helpers
# --------------------------------------------------------------------------
def _round_up(x, m):
    return (x + m - 1) // m * m


def _pad2(a, rows, cols):
    return jnp.pad(a, ((0, rows - a.shape[0]), (0, cols - a.shape[1])))


def prepare_params(params):
    """One-time prep (hoisted out of forward): pad to lane-dense shapes and cast
    matmul operands to bf16. Biases stay f32."""
    E, H = params["w1"].shape
    C = params["w_out"].shape[1]
    H_pad = _round_up(H, 128)
    C_pad = _round_up(C, 128)
    bf16 = jnp.bfloat16
    return {
        "w1": _pad2(params["w1"], E, H_pad).astype(bf16),
        "b1": _pad2(params["b1"], 1, H_pad).astype(jnp.float32),
        "hidden": [(_pad2(w, H_pad, H_pad).astype(bf16),
                    _pad2(b, 1, H_pad).astype(jnp.float32))
                   for (w, b) in params["hidden"]],
        "w_out": _pad2(params["w_out"], H_pad, C_pad).astype(bf16),
        "b_out": _pad2(params["b_out"], 1, C_pad).astype(jnp.float32),
        "num_class": C,
    }


# --------------------------------------------------------------------------
# Wrapper: row-tiled pallas_call over the (pre-padded) parameters.
# --------------------------------------------------------------------------
def n2v_predictor_forward(emb, pparams, *, tile_m=512):
    """emb: [N, E] node2vec embedding table (f32).
    pparams: output of prepare_params(). Returns log-probs [N, C] (f32)."""
    N, E = emb.shape
    C = pparams["num_class"]
    n_hidden = len(pparams["hidden"])
    H_pad = pparams["w1"].shape[1]
    C_pad = pparams["w_out"].shape[1]

    # Row tile: large to amortize the ~0.35 us per-grid-step overhead and fill the
    # MXU M dimension, but capped so the grid keeps >= 2 steps (both v7x TCs busy).
    TM = min(tile_m, max(8, _round_up(pl.cdiv(N, 2), 8)))
    N_pad = _round_up(N, TM)

    # Only pad rows when strictly needed -> no extra full-table HBM pass; the
    # f32 -> bf16 cast of the embedding happens inside the kernel.
    emb_in = emb if N_pad == N else jnp.pad(emb, ((0, N_pad - N), (0, 0)))

    hid_flat = []
    for (w, b) in pparams["hidden"]:
        hid_flat.append(w)
        hid_flat.append(b)
    inputs = [emb_in, pparams["w1"], pparams["b1"], *hid_flat,
              pparams["w_out"], pparams["b_out"]]

    def const_spec(a):
        # Weights/biases stay VMEM-resident across all row-tile grid steps.
        return pl.BlockSpec(a.shape, lambda i: (0, 0))

    in_specs = [pl.BlockSpec((TM, E), lambda i: (i, 0))]   # streamed row tiles
    in_specs += [const_spec(a) for a in inputs[1:]]        # resident weights

    weight_bytes = sum(int(a.size) * a.dtype.itemsize for a in inputs[1:])
    cost = pl.CostEstimate(
        flops=2 * N_pad * (E * H_pad + n_hidden * H_pad * H_pad + H_pad * C_pad),
        transcendentals=N_pad * (C_pad + 1),
        bytes_accessed=N_pad * (E * 4 + C * 4) + weight_bytes,
    )

    out = pl.pallas_call(
        _make_kernel(n_hidden, C),
        out_shape=jax.ShapeDtypeStruct((N_pad, C), jnp.float32),  # narrow output
        grid=(N_pad // TM,),
        in_specs=in_specs,
        out_specs=pl.BlockSpec((TM, C), lambda i: (i, 0)),
        compiler_params=pltpu.CompilerParams(
            dimension_semantics=("parallel",)),   # shards row tiles on v7x's 2 TCs
        cost_estimate=cost,
    )(*inputs)

    return out[:N]


# --------------------------------------------------------------------------
# Deterministic parameter init (Linear weights stored [in, out] so the kernel
# computes x @ W + b, equivalent to torch's x @ W.T + b).
# --------------------------------------------------------------------------
def init_params(key, embedding_dim, hidden, num_class, num_layers):
    def lin(kw, kb, fin, fout):
        bound = 1.0 / (fin ** 0.5)
        w = jax.random.uniform(kw, (fin, fout), jnp.float32, -bound, bound)
        b = jax.random.uniform(kb, (1, fout), jnp.float32, -bound, bound)
        return w, b

    ks = jax.random.split(key, 2 * (num_layers + 1))
    params = {}
    params["w1"], params["b1"] = lin(ks[0], ks[1], embedding_dim, hidden)
    hidden_layers = []
    for l in range(num_layers - 1):
        hidden_layers.append(lin(ks[2 + 2 * l], ks[3 + 2 * l], hidden, hidden))
    params["hidden"] = hidden_layers
    params["w_out"], params["b_out"] = lin(ks[-2], ks[-1], hidden, num_class)
    return params


# --------------------------------------------------------------------------
# Pure-JAX reference with identical bf16-operand / f32-accumulate math.
# --------------------------------------------------------------------------
def reference_forward(emb, params):
    bf16 = jnp.bfloat16
    h = jnp.dot(emb.astype(bf16), params["w1"].astype(bf16),
                preferred_element_type=jnp.float32) + params["b1"]
    h = jax.nn.relu(h)
    for (w, b) in params["hidden"]:
        h = jnp.dot(h.astype(bf16), w.astype(bf16),
                    preferred_element_type=jnp.float32) + b
        h = jax.nn.relu(h)
    logits = jnp.dot(h.astype(bf16), params["w_out"].astype(bf16),
                     preferred_element_type=jnp.float32) + params["b_out"]
    return jax.nn.log_softmax(logits, axis=-1)


if __name__ == "__main__":
    # Small deterministic problem consistent with the module defaults.
    num_nodes = 256
    embedding_dim = 16
    hidden = 32
    num_class = 2
    num_layers = 2            # -> one Linear(hidden, hidden) in self.hidden

    key = jax.random.PRNGKey(0)
    k_emb, k_p = jax.random.split(key)

    # Node2Vec embedding table (self.n2v.embedding.weight), deterministic init.
    # TODO(synk): Node2Vec random-walk training (train_n2v / n2v.loss) has no
    # Pallas equivalent here; only its embedding table is consumed by forward().
    emb = jax.random.normal(k_emb, (num_nodes, embedding_dim), jnp.float32) * 0.1

    params = init_params(k_p, embedding_dim, hidden, num_class, num_layers)
    pparams = prepare_params(params)   # pad + bf16-cast weights ONCE (hoisted)

    out = n2v_predictor_forward(emb, pparams)
    out = jax.block_until_ready(out)

    ref = reference_forward(emb, params)
    assert out.shape == (num_nodes, num_class)
    assert jnp.allclose(out, ref, atol=1e-3, rtol=1e-3), "mismatch vs reference"
    # log_softmax sanity: rows are proper log-probabilities.
    assert jnp.allclose(jnp.sum(jnp.exp(out), axis=-1), 1.0, atol=1e-3)

    print("KERNEL_OK")
</pallas_src>

<mosaic_0001>
module attributes {stable_mosaic.version = 11 : i64} {
  func.func @kernel(%arg0: i32, %arg1: memref<128x16xf32, #tpu.memory_space<vmem>>, %arg2: memref<16x128xbf16, #tpu.memory_space<vmem>>, %arg3: memref<1x128xf32, #tpu.memory_space<vmem>>, %arg4: memref<128x128xbf16, #tpu.memory_space<vmem>>, %arg5: memref<1x128xf32, #tpu.memory_space<vmem>>, %arg6: memref<128x128xbf16, #tpu.memory_space<vmem>>, %arg7: memref<1x128xf32, #tpu.memory_space<vmem>>, %arg8: memref<128x2xf32, #tpu.memory_space<vmem>>) attributes {dimension_semantics = [#tpu.dimension_semantics<parallel>], iteration_bounds = array<i64: 2>, scalar_prefetch = 0 : i64, scratch_operands = 0 : i64, tpu.core_type = #tpu.core_type<tc>, window_params = [{transform_indices = @transform_0, window_bounds = array<i64: 128, 16>}, {pipeline_mode = #tpu.pipeline_mode<synchronous>, transform_indices = @transform_1, window_bounds = array<i64: 16, 128>}, {pipeline_mode = #tpu.pipeline_mode<synchronous>, transform_indices = @transform_2, window_bounds = array<i64: 1, 128>}, {pipeline_mode = #tpu.pipeline_mode<synchronous>, transform_indices = @transform_3, window_bounds = array<i64: 128, 128>}, {pipeline_mode = #tpu.pipeline_mode<synchronous>, transform_indices = @transform_4, window_bounds = array<i64: 1, 128>}, {pipeline_mode = #tpu.pipeline_mode<synchronous>, transform_indices = @transform_5, window_bounds = array<i64: 128, 128>}, {pipeline_mode = #tpu.pipeline_mode<synchronous>, transform_indices = @transform_6, window_bounds = array<i64: 1, 128>}, {transform_indices = @transform_7, window_bounds = array<i64: 128, 2>}]} {
    %c0 = arith.constant 0 : index
    %c0_0 = arith.constant 0 : index
    %0 = vector.load %arg1[%c0, %c0_0] : memref<128x16xf32, #tpu.memory_space<vmem>>, vector<128x16xf32>
    %1 = arith.truncf %0 : vector<128x16xf32> to vector<128x16xbf16>
    %c0_1 = arith.constant 0 : index
    %c0_2 = arith.constant 0 : index
    %2 = vector.load %arg2[%c0_1, %c0_2] : memref<16x128xbf16, #tpu.memory_space<vmem>>, vector<16x128xbf16>
    %cst = arith.constant dense<0.000000e+00> : vector<128x128xf32>
    %3 = tpu.matmul %1, %2, %cst {dimension_numbers = #tpu.dot_dimension_numbers<[1], [0], [0], [1], [0, 0, 1, 1], [], []>} : vector<128x16xbf16>, vector<16x128xbf16>, vector<128x128xf32> -> vector<128x128xf32>
    %c0_3 = arith.constant 0 : index
    %c0_4 = arith.constant 0 : index
    %4 = vector.load %arg3[%c0_3, %c0_4] : memref<1x128xf32, #tpu.memory_space<vmem>>, vector<1x128xf32>
    %5 = vector.broadcast %4 : vector<1x128xf32> to vector<128x128xf32>
    %6 = arith.addf %3, %5 : vector<128x128xf32>
    %cst_5 = arith.constant 0.000000e+00 : f32
    %7 = vector.broadcast %cst_5 : f32 to vector<128x128xf32>
    %8 = arith.maximumf %6, %7 : vector<128x128xf32>
    %9 = arith.truncf %8 : vector<128x128xf32> to vector<128x128xbf16>
    %c0_6 = arith.constant 0 : index
    %c0_7 = arith.constant 0 : index
    %10 = vector.load %arg4[%c0_6, %c0_7] : memref<128x128xbf16, #tpu.memory_space<vmem>>, vector<128x128xbf16>
    %cst_8 = arith.constant dense<0.000000e+00> : vector<128x128xf32>
    %11 = tpu.matmul %9, %10, %cst_8 {dimension_numbers = #tpu.dot_dimension_numbers<[1], [0], [0], [1], [0, 0, 1, 1], [], []>} : vector<128x128xbf16>, vector<128x128xbf16>, vector<128x128xf32> -> vector<128x128xf32>
    %c0_9 = arith.constant 0 : index
    %c0_10 = arith.constant 0 : index
    %12 = vector.load %arg5[%c0_9, %c0_10] : memref<1x128xf32, #tpu.memory_space<vmem>>, vector<1x128xf32>
    %13 = vector.broadcast %12 : vector<1x128xf32> to vector<128x128xf32>
    %14 = arith.addf %11, %13 : vector<128x128xf32>
    %cst_11 = arith.constant 0.000000e+00 : f32
    %15 = vector.broadcast %cst_11 : f32 to vector<128x128xf32>
    %16 = arith.maximumf %14, %15 : vector<128x128xf32>
    %17 = arith.truncf %16 : vector<128x128xf32> to vector<128x128xbf16>
    %c0_12 = arith.constant 0 : index
    %c0_13 = arith.constant 0 : index
    %18 = vector.load %arg6[%c0_12, %c0_13] : memref<128x128xbf16, #tpu.memory_space<vmem>>, vector<128x128xbf16>
    %cst_14 = arith.constant dense<0.000000e+00> : vector<128x128xf32>
    %19 = tpu.matmul %17, %18, %cst_14 {dimension_numbers = #tpu.dot_dimension_numbers<[1], [0], [0], [1], [0, 0, 1, 1], [], []>} : vector<128x128xbf16>, vector<128x128xbf16>, vector<128x128xf32> -> vector<128x128xf32>
    %c0_15 = arith.constant 0 : index
    %c0_16 = arith.constant 0 : index
    %20 = vector.load %arg7[%c0_15, %c0_16] : memref<1x128xf32, #tpu.memory_space<vmem>>, vector<1x128xf32>
    %21 = vector.broadcast %20 : vector<1x128xf32> to vector<128x128xf32>
    %22 = arith.addf %19, %21 : vector<128x128xf32>
    %23 = tpu.iota {dimensions = array<i32: 1>} : vector<128x128xi32>
    %c2_i32 = arith.constant 2 : i32
    %24 = vector.broadcast %c2_i32 : i32 to vector<128x128xi32>
    %25 = arith.cmpi slt, %23, %24 : vector<128x128xi32>
    %cst_17 = arith.constant -1.000000e+30 : f32
    %26 = vector.broadcast %cst_17 : f32 to vector<128x128xf32>
    %27 = arith.select %25, %22, %26 : vector<128x128xi1>, vector<128x128xf32>
    %cst_18 = arith.constant dense<0xFF800000> : vector<128xf32>
    %28 = vector.multi_reduction <maximumf>, %27, %cst_18 [1] : vector<128x128xf32> to vector<128xf32>
    %29 = vector.shape_cast %28 : vector<128xf32> to vector<128x1xf32>
    %30 = vector.broadcast %29 : vector<128x1xf32> to vector<128x128xf32>
    %31 = arith.subf %27, %30 : vector<128x128xf32>
    %32 = math.exp %31 : vector<128x128xf32>
    %cst_19 = arith.constant dense<0.000000e+00> : vector<128xf32>
    %33 = vector.multi_reduction <add>, %32, %cst_19 [1] : vector<128x128xf32> to vector<128xf32>
    %34 = vector.shape_cast %33 : vector<128xf32> to vector<128x1xf32>
    %35 = math.log %34 : vector<128x1xf32>
    %36 = vector.broadcast %35 : vector<128x1xf32> to vector<128x128xf32>
    %37 = arith.subf %31, %36 : vector<128x128xf32>
    %38 = vector.extract_strided_slice %37 {offsets = [0, 0], sizes = [128, 2], strides = [1, 1]} : vector<128x128xf32> to vector<128x2xf32>
    %c0_20 = arith.constant 0 : index
    %c0_21 = arith.constant 0 : index
    %39 = vector.load %arg8[%c0_20, %c0_21] : memref<128x2xf32, #tpu.memory_space<vmem>>, vector<128x2xf32>
    tpu.vector_store %arg8[%c0_20, %c0_21], %38 {strides = array<i32>} : memref<128x2xf32, #tpu.memory_space<vmem>>, vector<128x2xf32>,
    return
  }
  func.func @transform_0(%arg0: i32) -> (i32, i32) {
    %c0_i32 = arith.constant 0 : i32
    %c0_i32_0 = arith.constant 0 : i32
    return %arg0, %c0_i32 : i32, i32
  }
  func.func @transform_1(%arg0: i32) -> (i32, i32) {
    %c0_i32 = arith.constant 0 : i32
    %c0_i32_0 = arith.constant 0 : i32
    %c0_i32_1 = arith.constant 0 : i32
    return %c0_i32, %c0_i32_0 : i32, i32
  }
  func.func @transform_2(%arg0: i32) -> (i32, i32) {
    %c0_i32 = arith.constant 0 : i32
    %c0_i32_0 = arith.constant 0 : i32
    %c0_i32_1 = arith.constant 0 : i32
    return %c0_i32, %c0_i32_0 : i32, i32
  }
  func.func @transform_3(%arg0: i32) -> (i32, i32) {
    %c0_i32 = arith.constant 0 : i32
    %c0_i32_0 = arith.constant 0 : i32
    %c0_i32_1 = arith.constant 0 : i32
    return %c0_i32, %c0_i32_0 : i32, i32
  }
  func.func @transform_4(%arg0: i32) -> (i32, i32) {
    %c0_i32 = arith.constant 0 : i32
    %c0_i32_0 = arith.constant 0 : i32
    %c0_i32_1 = arith.constant 0 : i32
    return %c0_i32, %c0_i32_0 : i32, i32
  }
  func.func @transform_5(%arg0: i32) -> (i32, i32) {
    %c0_i32 = arith.constant 0 : i32
    %c0_i32_0 = arith.constant 0 : i32
    %c0_i32_1 = arith.constant 0 : i32
    return %c0_i32, %c0_i32_0 : i32, i32
  }
  func.func @transform_6(%arg0: i32) -> (i32, i32) {
    %c0_i32 = arith.constant 0 : i32
    %c0_i32_0 = arith.constant 0 : i32
    %c0_i32_1 = arith.constant 0 : i32
    return %c0_i32, %c0_i32_0 : i32, i32
  }
  func.func @transform_7(%arg0: i32) -> (i32, i32) {
    %c0_i32 = arith.constant 0 : i32
    %c0_i32_0 = arith.constant 0 : i32
    return %arg0, %c0_i32 : i32, i32
  }
}

</mosaic_0001>

<bundles_post_ra>
// kernel: tpu_custom_call.1
= control target key start
LH: loop header
LB: loop body
LE: loop exit
PB: predicated region body
PF: predicated region fallthrough
CT: control target
= control target key end

     0   :  { %s1170_s24 = smov 0   ;;  %s1505_s0 = inlined_call_operand.vmem [shape: f32[256,16], index: 0, kind: input, shape index: {}]   ;;  %s1506_s1 = inlined_call_operand.vmem [shape: bf16[16,128], index: 1, kind: input, shape index: {}]   ;;  %s1507_s2 = inlined_call_operand.vmem [shape: f32[1,128], index: 2, kind: input, shape index: {}]   ;;  %s1508_s3 = inlined_call_operand.vmem [shape: bf16[128,128], index: 3, kind: input, shape index: {}]   ;;  %s1509_s4 = inlined_call_operand.vmem [shape: f32[1,128], index: 4, kind: input, shape index: {}]   ;;  %s1510_s5 = inlined_call_operand.vmem [shape: bf16[128,128], index: 5, kind: input, shape index: {}]   ;;  %s1511_s6 = inlined_call_operand.vmem [shape: f32[1,128], index: 6, kind: input, shape index: {}]   ;;  %s1512_s7 = inlined_call_operand.vmem [shape: f32[256,2], index: 7, kind: output, shape index: {}]  }
   0x1 LB: > { %s927_s25 = sadd.s32 4294967295, %s1128_s24   ;;  %p931_p0 = scmp.ge.s32.totalorder %s1128_s24, 1  ;;  %s1128_s24 = sphi %s1170_s24, %s17_s24  }
   0x2   : > { %p238_p1 = scmp.lt.s32.totalorder %s1128_s24, 3 }
   0x4   : > { %p239_p2 = pnand %p931_p0, %p238_p1 }
   0x5   : > { %s932_s28 = sshll.u32 (!%p239_p2), %s927_s25, 4 }
   0x6   : > { %242 = sbr.rel (%p239_p2) target bundleno = 813 (0x32d), region = 48  ;;  %p271_p3 = scmp.lt.s32.totalorder (!%p239_p2), %s932_s28, 31 }
   0xb   : > { %v1014_v0 = vld [vmem:[%s1506_s1] sm:$0xff]  ;;  %s1514_s28 = smov (!%p271_p3, %s932_s28), 31  ;;  %vm319_vm0 = vcmask 130048   ;;  %v1022_v16 = vld [vmem:[%s1508_s3 + $0x38] sm:$0xff]  ;;  %v1021_v20 = vld [vmem:[%s1508_s3 + $0x30] sm:$0xff]  ;;  %vm854_vm2 = vcmask 15360  }
   0xc   : > { %351 = vmatpush.bf16.msra.mxu0 %v1014_v0  ;;  %s933_s29 = sshll.u32 %s1514_s28, 3  ;;  %485 = vmatpush.bf16.msra.mxu1 %v1022_v16  ;;  %v1020_v21 = vld [vmem:[%s1508_s3 + $0x28] sm:$0xff]  ;;  %v1019_v22 = vld [vmem:[%s1508_s3 + $0x20] sm:$0xff]  ;;  %v1018_v25 = vld [vmem:[%s1508_s3 + $0x18] sm:$0xff] }
   0xd   : > { %s1189_s9 = scalar_lea.vmem %s1505_s0, %s933_s29  ;;  %1031 = vmatpush.bf16.msra.mxu3 %v1022_v16  ;;  %v1017_v27 = vld [vmem:[%s1508_s3 + $0x10] sm:$0xff]  ;;  %v1016_v28 = vld [vmem:[%s1508_s3 + $0x8] sm:$0xff]  ;;  %v1015_v29 = vld [vmem:[%s1508_s3] sm:$0xff]  ;;  %s1452_s10 = scalar_lea.vmem %s1512_s7, %s933_s29 }
   0xe   : > { %v283_v1 = vld [vmem:[%s1189_s9] sm:$0xff]  ;;  %v284_v2 = vld [vmem:[%s1189_s9 + $0x8] sm:$0xff]  ;;  %v285_v4 = vld [vmem:[%s1189_s9 + $0x10] sm:$0xff] }
   0xf   : > { %v299_v3 = vpack.c.bf16 %v284_v2, %v283_v1  ;;  %v286_v5 = vld [vmem:[%s1189_s9 + $0x18] sm:$0xff]  ;;  %v287_v7 = vld [vmem:[%s1189_s9 + $0x20] sm:$0xff]  ;;  %v288_v8 = vld [vmem:[%s1189_s9 + $0x28] sm:$0xff] }
  0x10   : > { %v300_v6 = vpack.c.bf16 %v286_v5, %v285_v4  ;;  %v301_v9 = vpack.c.bf16 %v288_v8, %v287_v7  ;;  %v289_v10 = vld [vmem:[%s1189_s9 + $0x30] sm:$0xff]  ;;  %v290_v11 = vld [vmem:[%s1189_s9 + $0x38] sm:$0xff]  ;;  %v291_v13 = vld [vmem:[%s1189_s9 + $0x40] sm:$0xff]  ;;  %486 = vmatpush.bf16.msra.mxu1 %v1021_v20 }
  0x11   : > { %940 = vmatmul.msk.bf16.vlgmr.msra.gmra.mxu0 %vm319_vm0, %v299_v3  ;;  %v302_v12 = vpack.c.bf16 %v290_v11, %v289_v10  ;;  %v292_v14 = vld [vmem:[%s1189_s9 + $0x48] sm:$0xff]  ;;  %v293_v17 = vld [vmem:[%s1189_s9 + $0x50] sm:$0xff]  ;;  %v294_v18 = vld [vmem:[%s1189_s9 + $0x58] sm:$0xff]  ;;  %1032 = vmatpush.bf16.msra.mxu3 %v1021_v20 }
  0x12   : > { %v303_v15 = vpack.c.bf16 %v292_v14, %v291_v13  ;;  %v304_v19 = vpack.c.bf16 %v294_v18, %v293_v17  ;;  %v295_v23 = vld [vmem:[%s1189_s9 + $0x60] sm:$0xff]  ;;  %v296_v24 = vld [vmem:[%s1189_s9 + $0x68] sm:$0xff]  ;;  %v297_v30 = vld [vmem:[%s1189_s9 + $0x70] sm:$0xff] }
  0x13   : > { %v305_v26 = vpack.c.bf16 %v296_v24, %v295_v23  ;;  %v298_v31 = vld [vmem:[%s1189_s9 + $0x78] sm:$0xff]  ;;  %v1242_v34 = vld [vmem:[%s1507_s2] ss:$0 sm:$0xff]  ;;  %v1029_v13 = vld [vmem:[%s1510_s5 + $0x30] sm:$0xff] }
  0x14   : > { %487 = vmatpush.bf16.msra.mxu1 %v1020_v21  ;;  %v306_v32 = vpack.c.bf16 %v298_v31, %v297_v30  ;;  %v1027_v16 = vld [vmem:[%s1510_s5 + $0x20] sm:$0xff]  ;;  %v1026_v20 = vld [vmem:[%s1510_s5 + $0x18] sm:$0xff]  ;;  %v1025_v24 = vld [vmem:[%s1510_s5 + $0x10] sm:$0xff] }
  0x15   : > { %1033 = vmatpush.bf16.msra.mxu3 %v1020_v21 }
  0x18   : > { %488 = vmatpush.bf16.msra.mxu1 %v1019_v22 }
  0x19   : > { %1034 = vmatpush.bf16.msra.mxu3 %v1019_v22 }
  0x1c   : > { %489 = vmatpush.bf16.msra.mxu1 %v1018_v25 }
  0x1d   : > { %1035 = vmatpush.bf16.msra.mxu3 %v1018_v25 }
  0x20   : > { %490 = vmatpush.bf16.msra.mxu1 %v1017_v27 }
  0x21   : > { %941 = vmatmul.msk.bf16.gmra.mxu0 %vm319_vm0, %v300_v6  ;;  %1036 = vmatpush.bf16.msra.mxu3 %v1017_v27  ;;  %v1023_v27 = vld [vmem:[%s1510_s5] sm:$0xff] }
  0x24   : > { %491 = vmatpush.bf16.msra.mxu1 %v1016_v28 }
  0x25   : > { %1037 = vmatpush.bf16.msra.mxu3 %v1016_v28 }
  0x28   : > { %492 = vmatpush.bf16.msra.mxu1 %v1015_v29 }
  0x29   : > { %1038 = vmatpush.bf16.msra.mxu3 %v1015_v29 }
  0x31   : > { %942 = vmatmul.msk.bf16.gmra.mxu0 %vm319_vm0, %v301_v9  ;;  %v1030_v9 = vld [vmem:[%s1510_s5 + $0x38] sm:$0xff] }
  0x32   : > { %626 = vmatpush.bf16.msra.mxu2 %v1030_v9  ;;  %1039 = vmatpush.bf16.msrb.mxu3 %v1030_v9 }
  0x36   : > { %627 = vmatpush.bf16.msra.mxu2 %v1029_v13  ;;  %1040 = vmatpush.bf16.msrb.mxu3 %v1029_v13 }
  0x41   : > { %943 = vmatmul.msk.bf16.gmra.mxu0 %vm319_vm0, %v302_v12 }
  0x51   : > { %944 = vmatmul.msk.bf16.gmra.mxu0 %vm319_vm0, %v303_v15  ;;  %v1028_v15 = vld [vmem:[%s1510_s5 + $0x28] sm:$0xff] }
  0x52   : > { %628 = vmatpush.bf16.msra.mxu2 %v1028_v15  ;;  %1041 = vmatpush.bf16.msrb.mxu3 %v1028_v15 }
  0x56   : > { %629 = vmatpush.bf16.msra.mxu2 %v1027_v16  ;;  %1042 = vmatpush.bf16.msrb.mxu3 %v1027_v16 }
  0x5a   : > { %630 = vmatpush.bf16.msra.mxu2 %v1026_v20  ;;  %1043 = vmatpush.bf16.msrb.mxu3 %v1026_v20 }
  0x5e   : > { %631 = vmatpush.bf16.msra.mxu2 %v1025_v24  ;;  %1044 = vmatpush.bf16.msrb.mxu3 %v1025_v24 }
  0x61   : > { %945 = vmatmul.msk.bf16.gmra.mxu0 %vm319_vm0, %v304_v19 }
  0x71   : > { %946 = vmatmul.msk.bf16.gmra.mxu0 %vm319_vm0, %v305_v26  ;;  %v1024_v26 = vld [vmem:[%s1510_s5 + $0x8] sm:$0xff] }
  0x72   : > { %632 = vmatpush.bf16.msra.mxu2 %v1024_v26  ;;  %1045 = vmatpush.bf16.msrb.mxu3 %v1024_v26 }
  0x76   : > { %633 = vmatpush.bf16.msra.mxu2 %v1023_v27  ;;  %1046 = vmatpush.bf16.msrb.mxu3 %v1023_v27  ;;  %v675_v27 = vlaneseq }
  0x81   : > { %947 = vmatmul.msk.bf16.gmra.mxu0 %vm319_vm0, %v306_v32 }
  0x8e   : > { %v353_v33 = vpop.f32.mrf.mxu0 }
  0x8f   : > { %v354_v35 = vadd.f32 %v1242_v34, %v353_v33 }
  0x91   : > { %v393_v38 = vmax.f32 %v354_v35, 0.0 }
  0x96   : > { %v355_v36 = vpop.f32.mrf.mxu0 }
  0x97   : > { %v356_v37 = vadd.f32 %v1242_v34, %v355_v36  ;;  %v1056_v36 = vld [vmem:[%s1509_s4] ss:$0 sm:$0xff] }
  0x99   : > { %v394_v39 = vmax.f32 %v356_v37, 0.0 }
  0x9b   : > { %v409_v40 = vpack.c.bf16 %v394_v39, %v393_v38 }
  0x9d   : > { %493 = vmatmul.bf16.vlgmr.msra.gmra.mxu1 %v409_v40 }
  0x9e   : > { %v358_v41 = vpop.f32.mrf.mxu0 }
  0x9f   : > { %v359_v42 = vadd.f32 %v1242_v34, %v358_v41 }
  0xa1   : > { %v395_v45 = vmax.f32 %v359_v42, 0.0 }
  0xa6   : > { %v360_v43 = vpop.f32.mrf.mxu0 }
  0xa7   : > { %v361_v44 = vadd.f32 %v1242_v34, %v360_v43 }
  0xa9   : > { %v396_v46 = vmax.f32 %v361_v44, 0.0 }
  0xab   : > { %v410_v47 = vpack.c.bf16 %v396_v46, %v395_v45 }
  0xad   : > { %498 = vmatmul.bf16.gmra.mxu1 %v410_v47 }
  0xae   : > { %v363_v48 = vpop.f32.mrf.mxu0 }
  0xaf   : > { %v364_v49 = vadd.f32 %v1242_v34, %v363_v48 }
  0xb1   : > { %v397_v52 = vmax.f32 %v364_v49, 0.0 }
  0xb6   : > { %v365_v50 = vpop.f32.mrf.mxu0 }
  0xb7   : > { %v366_v51 = vadd.f32 %v1242_v34, %v365_v50 }
  0xb9   : > { %v398_v53 = vmax.f32 %v366_v51, 0.0 }
  0xbb   : > { %v411_v54 = vpack.c.bf16 %v398_v53, %v397_v52 }
  0xbd   : > { %503 = vmatmul.bf16.gmra.mxu1 %v411_v54 }
  0xbe   : > { %v368_v55 = vpop.f32.mrf.mxu0 }
  0xbf   : > { %v369_v56 = vadd.f32 %v1242_v34, %v368_v55 }
  0xc1   : > { %v399_v59 = vmax.f32 %v369_v56, 0.0 }
  0xc6   : > { %v370_v57 = vpop.f32.mrf.mxu0 }
  0xc7   : > { %v371_v58 = vadd.f32 %v1242_v34, %v370_v57 }
  0xc9   : > { %v400_v60 = vmax.f32 %v371_v58, 0.0 }
  0xcb   : > { %v412_v61 = vpack.c.bf16 %v400_v60, %v399_v59 }
  0xcd   : > { %508 = vmatmul.bf16.gmra.mxu1 %v412_v61 }
  0xce   : > { %v373_v62 = vpop.f32.mrf.mxu0 }
  0xcf   : > { %v374_v63 = vadd.f32 %v1242_v34, %v373_v62 }
  0xd1   : > { %v401_v2 = vmax.f32 %v374_v63, 0.0 }
  0xd6   : > { %v375_v0 = vpop.f32.mrf.mxu0 }
  0xd7   : > { %v376_v1 = vadd.f32 %v1242_v34, %v375_v0 }
  0xd9   : > { %v402_v3 = vmax.f32 %v376_v1, 0.0 }
  0xdb   : > { %v413_v4 = vpack.c.bf16 %v402_v3, %v401_v2 }
  0xdd   : > { %513 = vmatmul.bf16.gmra.mxu1 %v413_v4 }
  0xde   : > { %v378_v5 = vpop.f32.mrf.mxu0 }
  0xdf   : > { %v379_v6 = vadd.f32 %v1242_v34, %v378_v5 }
  0xe1   : > { %v403_v10 = vmax.f32 %v379_v6, 0.0 }
  0xe6   : > { %v380_v7 = vpop.f32.mrf.mxu0 }
  0xe7   : > { %v381_v8 = vadd.f32 %v1242_v34, %v380_v7 }
  0xe9   : > { %v404_v11 = vmax.f32 %v381_v8, 0.0 }
  0xeb   : > { %v414_v12 = vpack.c.bf16 %v404_v11, %v403_v10 }
  0xed   : > { %518 = vmatmul.bf16.gmra.mxu1 %v414_v12 }
  0xee   : > { %v383_v14 = vpop.f32.mrf.mxu0 }
  0xef   : > { %v384_v17 = vadd.f32 %v1242_v34, %v383_v14 }
  0xf1   : > { %v405_v21 = vmax.f32 %v384_v17, 0.0 }
  0xf6   : > { %v385_v18 = vpop.f32.mrf.mxu0 }
  0xf7   : > { %v386_v19 = vadd.f32 %v1242_v34, %v385_v18 }
  0xf9   : > { %v406_v22 = vmax.f32 %v386_v19, 0.0 }
  0xfb   : > { %v415_v23 = vpack.c.bf16 %v406_v22, %v405_v21 }
  0xfd   : > { %523 = vmatmul.bf16.vlgmr.msra.gmra.mxu3 %v415_v23 }
  0xfe   : > { %v388_v25 = vpop.f32.mrf.mxu0 }
  0xff   : > { %v389_v28 = vadd.f32 %v1242_v34, %v388_v25 }
 0x101   : > { %v407_v31 = vmax.f32 %v389_v28, 0.0  ;;  %v1287_v28 = vand.u32 127, %v675_v27 }
 0x103   : > { %vm677_vm1 = vcmp.lt.s32.totalorder %v1287_v28, 2 }
 0x106   : > { %v390_v29 = vpop.f32.mrf.mxu0 }
 0x107   : > { %v391_v30 = vadd.f32 %v1242_v34, %v390_v29  ;;  %v1292_v29 = vld [vmem:[%s1511_s6] ss:$0 sm:$0xff] }
 0x109   : > { %v408_v32 = vmax.f32 %v391_v30, 0.0 }
 0x10b   : > { %v416_v33 = vpack.c.bf16 %v408_v32, %v407_v31 }
 0x10d   : > { %528 = vmatmul.bf16.gmra.mxu3 %v416_v33 }
 0x11a   : > { %v494_v35 = vpop.f32.mrf.mxu1 }
 0x11b   : > { %v495_v37 = vadd.f32 %v1056_v36, %v494_v35 }
 0x11d   : > { %v534_v40 = vmax.f32 %v495_v37, 0.0 }
 0x122   : > { %v496_v38 = vpop.f32.mrf.mxu1 }
 0x123   : > { %v497_v39 = vadd.f32 %v1056_v36, %v496_v38 }
 0x125   : > { %v535_v41 = vmax.f32 %v497_v39, 0.0 }
 0x127   : > { %v550_v42 = vpack.c.bf16 %v535_v41, %v534_v40 }
 0x129   : > { %634 = vmatmul.bf16.vlgmr.msra.gmra.mxu2 %v550_v42 }
 0x12a   : > { %v499_v43 = vpop.f32.mrf.mxu1 }
 0x12b   : > { %v500_v44 = vadd.f32 %v1056_v36, %v499_v43 }
 0x12d   : > { %v536_v46 = vmax.f32 %v500_v44, 0.0 }
 0x132   : > { %v501_v45 = vpop.f32.mrf.mxu1 }
 0x133   : > { %v502_v34 = vadd.f32 %v1056_v36, %v501_v45 }
 0x135   : > { %v537_v47 = vmax.f32 %v502_v34, 0.0 }
 0x137   : > { %v551_v48 = vpack.c.bf16 %v537_v47, %v536_v46 }
 0x139   : > { %639 = vmatmul.bf16.gmra.mxu2 %v551_v48 }
 0x13a   : > { %v504_v49 = vpop.f32.mrf.mxu1 }
 0x13b   : > { %v505_v50 = vadd.f32 %v1056_v36, %v504_v49 }
 0x13d   : > { %v538_v53 = vmax.f32 %v505_v50, 0.0 }
 0x142   : > { %v506_v51 = vpop.f32.mrf.mxu1 }
 0x143   : > { %v507_v52 = vadd.f32 %v1056_v36, %v506_v51 }
 0x145   : > { %v539_v54 = vmax.f32 %v507_v52, 0.0 }
 0x147   : > { %v552_v55 = vpack.c.bf16 %v539_v54, %v538_v53 }
 0x149   : > { %644 = vmatmul.bf16.gmra.mxu2 %v552_v55 }
 0x14a   : > { %v509_v56 = vpop.f32.mrf.mxu1 }
 0x14b   : > { %v510_v57 = vadd.f32 %v1056_v36, %v509_v56 }
 0x14d   : > { %v540_v60 = vmax.f32 %v510_v57, 0.0 }
 0x152   : > { %v511_v58 = vpop.f32.mrf.mxu1 }
 0x153   : > { %v512_v59 = vadd.f32 %v1056_v36, %v511_v58 }
 0x155   : > { %v541_v61 = vmax.f32 %v512_v59, 0.0 }
 0x157   : > { %v553_v62 = vpack.c.bf16 %v541_v61, %v540_v60 }
 0x159   : > { %649 = vmatmul.bf16.gmra.mxu2 %v553_v62 }
 0x15a   : > { %v514_v63 = vpop.f32.mrf.mxu1 }
 0x15b   : > { %v515_v0 = vadd.f32 %v1056_v36, %v514_v63 }
 0x15d   : > { %v542_v3 = vmax.f32 %v515_v0, 0.0 }
 0x162   : > { %v516_v1 = vpop.f32.mrf.mxu1 }
 0x163   : > { %v517_v2 = vadd.f32 %v1056_v36, %v516_v1 }
 0x165   : > { %v543_v4 = vmax.f32 %v517_v2, 0.0 }
 0x167   : > { %v554_v5 = vpack.c.bf16 %v543_v4, %v542_v3 }
 0x169   : > { %654 = vmatmul.bf16.gmra.mxu2 %v554_v5 }
 0x16a   : > { %v519_v6 = vpop.f32.mrf.mxu1 }
 0x16b   : > { %v520_v7 = vadd.f32 %v1056_v36, %v519_v6 }
 0x16d   : > { %v544_v10 = vmax.f32 %v520_v7, 0.0 }
 0x172   : > { %v521_v8 = vpop.f32.mrf.mxu1 }
 0x173   : > { %v522_v9 = vadd.f32 %v1056_v36, %v521_v8 }
 0x175   : > { %v545_v11 = vmax.f32 %v522_v9, 0.0 }
 0x177   : > { %v555_v12 = vpack.c.bf16 %v545_v11, %v544_v10 }
 0x179   : > { %659 = vmatmul.bf16.gmra.mxu2 %v555_v12 }
 0x180   : > { %v524_v13 = vpop.f32.mrf.mxu3 }
 0x181   : > { %v525_v14 = vadd.f32 %v1056_v36, %v524_v13 }
 0x183   : > { %v546_v17 = vmax.f32 %v525_v14, 0.0 }
 0x188   : > { %v526_v15 = vpop.f32.mrf.mxu3 }
 0x189   : > { %v527_v16 = vadd.f32 %v1056_v36, %v526_v15 }
 0x18b   : > { %v547_v18 = vmax.f32 %v527_v16, 0.0 }
 0x18d   : > { %v556_v19 = vpack.c.bf16 %v547_v18, %v546_v17 }
 0x18f   : > { %664 = vmatmul.bf16.vlgmr.msrb.gmra.mxu3 %v556_v19 }
 0x190   : > { %v529_v20 = vpop.f32.mrf.mxu3 }
 0x191   : > { %v530_v21 = vadd.f32 %v1056_v36, %v529_v20 }
 0x193   : > { %v548_v24 = vmax.f32 %v530_v21, 0.0 }
 0x198   : > { %v531_v22 = vpop.f32.mrf.mxu3 }
 0x199   : > { %v532_v23 = vadd.f32 %v1056_v36, %v531_v22 }
 0x19b   : > { %v549_v25 = vmax.f32 %v532_v23, 0.0 }
 0x19d   : > { %v557_v26 = vpack.c.bf16 %v549_v25, %v548_v24 }
 0x19f   : > { %669 = vmatmul.bf16.gmra.mxu3 %v557_v26 }
 0x1ac   : > { %v635_v30 = vpop.f32.mrf.mxu2 }
 0x1ad   : > { %v636_v31 = vadd.f32 %v1292_v29, %v635_v30 }
 0x1af   : > { %v678_v32 = vsel %vm677_vm1, %v636_v31, -1e+30 }
 0x1b0   : > { %694 = vmax.xlane.f32.xlu0 %v678_v32 }
 0x1b4   : > { %v637_v33 = vpop.f32.mrf.mxu2 }
 0x1b5   : > { %v638_v35 = vadd.f32 %v1292_v29, %v637_v33 }
 0x1b7   : > { %v679_v36 = vsel %vm677_vm1, %v638_v35, -1e+30 }
 0x1b8   : > { %696 = vmax.xlane.f32.xlu0 %v679_v36 }
 0x1bc   : > { %v640_v37 = vpop.f32.mrf.mxu2 }
 0x1bd   : > { %v641_v38 = vadd.f32 %v1292_v29, %v640_v37 }
 0x1bf   : > { %v1304_v39 = vsel %vm677_vm1, %v641_v38, -1e+30 }
 0x1c0   : > { %698 = vmax.xlane.f32.xlu1 %v1304_v39 }
 0x1c4   : > { %v642_v40 = vpop.f32.mrf.mxu2 }
 0x1c5   : > { %v643_v41 = vadd.f32 %v1292_v29, %v642_v40 }
 0x1c7   : > { %v1310_v42 = vsel %vm677_vm1, %v643_v41, -1e+30 }
 0x1c8   : > { %700 = vmax.xlane.f32.xlu1 %v1310_v42 }
 0x1cc   : > { %v645_v43 = vpop.f32.mrf.mxu2 }
 0x1cd   : > { %v646_v44 = vadd.f32 %v1292_v29, %v645_v43 }
 0x1cf   : > { %v1316_v45 = vsel %vm677_vm1, %v646_v44, -1e+30 }
 0x1d0   : > { %702 = vmax.xlane.f32.xlu2 %v1316_v45 }
 0x1d4   : > { %v647_v34 = vpop.f32.mrf.mxu2 }
 0x1d5   : > { %v648_v46 = vadd.f32 %v1292_v29, %v647_v34 }
 0x1d7   : > { %v1322_v47 = vsel %vm677_vm1, %v648_v46, -1e+30 }
 0x1d8   : > { %704 = vmax.xlane.f32.xlu2 %v1322_v47 }
 0x1dc   : > { %v650_v48 = vpop.f32.mrf.mxu2 }
 0x1dd   : > { %v651_v49 = vadd.f32 %v1292_v29, %v650_v48 }
 0x1df   : > { %v1328_v50 = vsel %vm677_vm1, %v651_v49, -1e+30 }
 0x1e0   : > { %706 = vmax.xlane.f32.xlu0 %v1328_v50 }
 0x1e4   : > { %v652_v51 = vpop.f32.mrf.mxu2 }
 0x1e5   : > { %v653_v52 = vadd.f32 %v1292_v29, %v652_v51 }
 0x1e7   : > { %v1334_v53 = vsel %vm677_vm1, %v653_v52, -1e+30 }
 0x1e8   : > { %708 = vmax.xlane.f32.xlu1 %v1334_v53 }
 0x1ec   : > { %v655_v54 = vpop.f32.mrf.mxu2 }
 0x1ed   : > { %v656_v55 = vadd.f32 %v1292_v29, %v655_v54 }
 0x1ef   : > { %v1340_v56 = vsel %vm677_vm1, %v656_v55, -1e+30 }
 0x1f0   : > { %710 = vmax.xlane.f32.xlu2 %v1340_v56 }
 0x1f4   : > { %v657_v57 = vpop.f32.mrf.mxu2 }
 0x1f5   : > { %v658_v58 = vadd.f32 %v1292_v29, %v657_v57 }
 0x1f7   : > { %v1346_v59 = vsel %vm677_vm1, %v658_v58, -1e+30 }
 0x1f8   : > { %712 = vmax.xlane.f32.xlu0 %v1346_v59 }
 0x1fc   : > { %v660_v60 = vpop.f32.mrf.mxu2 }
 0x1fd   : > { %v661_v61 = vadd.f32 %v1292_v29, %v660_v60 }
 0x1ff   : > { %v1352_v62 = vsel %vm677_vm1, %v661_v61, -1e+30 }
 0x200   : > { %714 = vmax.xlane.f32.xlu1 %v1352_v62 }
 0x204   : > { %v662_v63 = vpop.f32.mrf.mxu2 }
 0x205   : > { %v663_v0 = vadd.f32 %v1292_v29, %v662_v63 }
 0x207   : > { %v1358_v1 = vsel %vm677_vm1, %v663_v0, -1e+30 }
 0x208   : > { %716 = vmax.xlane.f32.xlu2 %v1358_v1 }
 0x212   : > { %v665_v2 = vpop.f32.mrf.mxu3 }
 0x213   : > { %v666_v3 = vadd.f32 %v1292_v29, %v665_v2 }
 0x215   : > { %v1364_v4 = vsel %vm677_vm1, %v666_v3, -1e+30 }
 0x216   : > { %718 = vmax.xlane.f32.xlu0 %v1364_v4 }
 0x21a   : > { %v667_v5 = vpop.f32.mrf.mxu3 }
 0x21b   : > { %v668_v6 = vadd.f32 %v1292_v29, %v667_v5 }
 0x21d   : > { %v1370_v7 = vsel %vm677_vm1, %v668_v6, -1e+30 }
 0x21e   : > { %720 = vmax.xlane.f32.xlu1 %v1370_v7 }
 0x222   : > { %v670_v8 = vpop.f32.mrf.mxu3 }
 0x223   : > { %v671_v9 = vadd.f32 %v1292_v29, %v670_v8  ;;  %v695_v10 = vpop.xlane.xlu0 %694 }
 0x224   : > { %v1374_v11 = vsub.f32 %v678_v32, %v695_v10 }
 0x225   : > { %v1378_v12 = vsel %vm677_vm1, %v671_v9, -1e+30 }
 0x226   : > { %v742_v13 = vmul.f32 1.442695, %v1374_v11  ;;  %722 = vmax.xlane.f32.xlu2 %v1378_v12 }
 0x228   : > { %1058 = vpow2.f32 %v742_v13 }
 0x22a   : > { %v672_v14 = vpop.f32.mrf.mxu3 }
 0x22b   : > { %v673_v15 = vadd.f32 %v1292_v29, %v672_v14  ;;  %v697_v16 = vpop.xlane.xlu0 %696 }
 0x22c   : > { %v1383_v17 = vsub.f32 %v679_v36, %v697_v16 }
 0x22d   : > { %v1387_v18 = vsel %vm677_vm1, %v673_v15, -1e+30 }
 0x22e   : > { %v1059_v19 = vpop.eup %1058  ;;  %v744_v20 = vmul.f32 1.442695, %v1383_v17  ;;  %724 = vmax.xlane.f32.xlu0 %v1387_v18 }
 0x22f   : > { %774 = vadd.xlane.f32.xlu1 %v1059_v19 }
 0x230   : > { %1060 = vpow2.f32 %v744_v20 }
 0x233   : > { %v699_v21 = vpop.xlane.xlu1 %698 }
 0x234   : > { %v1392_v22 = vsub.f32 %v1304_v39, %v699_v21 }
 0x236   : > { %v1061_v23 = vpop.eup %1060  ;;  %v746_v24 = vmul.f32 1.442695, %v1392_v22 }
 0x237   : > { %776 = vadd.xlane.f32.xlu2 %v1061_v23 }
 0x238   : > { %1062 = vpow2.f32 %v746_v24 }
 0x23b   : > { %v701_v25 = vpop.xlane.xlu1 %700 }
 0x23c   : > { %v1396_v26 = vsub.f32 %v1310_v42, %v701_v25 }
 0x23e   : > { %v1063_v27 = vpop.eup %1062  ;;  %v748_v28 = vmul.f32 1.442695, %v1396_v26 }
 0x23f   : > { %778 = vadd.xlane.f32.xlu0 %v1063_v27 }
 0x240   : > { %1064 = vpow2.f32 %v748_v28 }
 0x243   : > { %v703_v29 = vpop.xlane.xlu2 %702 }
 0x244   : > { %v1400_v30 = vsub.f32 %v1316_v45, %v703_v29 }
 0x246   : > { %v1065_v31 = vpop.eup %1064  ;;  %v750_v32 = vmul.f32 1.442695, %v1400_v30 }
 0x247   : > { %780 = vadd.xlane.f32.xlu1 %v1065_v31 }
 0x248   : > { %1066 = vpow2.f32 %v750_v32 }
 0x24b   : > { %v705_v33 = vpop.xlane.xlu2 %704 }
 0x24c   : > { %v1404_v35 = vsub.f32 %v1322_v47, %v705_v33 }
 0x24e   : > { %v1067_v36 = vpop.eup %1066  ;;  %v752_v37 = vmul.f32 1.442695, %v1404_v35 }
 0x24f   : > { %782 = vadd.xlane.f32.xlu2 %v1067_v36 }
 0x250   : > { %1068 = vpow2.f32 %v752_v37 }
 0x253   : > { %v707_v38 = vpop.xlane.xlu0 %706 }
 0x254   : > { %v1408_v39 = vsub.f32 %v1328_v50, %v707_v38 }
 0x256   : > { %v1069_v40 = vpop.eup %1068  ;;  %v754_v41 = vmul.f32 1.442695, %v1408_v39 }
 0x257   : > { %784 = vadd.xlane.f32.xlu0 %v1069_v40 }
 0x258   : > { %1070 = vpow2.f32 %v754_v41 }
 0x25b   : > { %v709_v42 = vpop.xlane.xlu1 %708 }
 0x25c   : > { %v1412_v43 = vsub.f32 %v1334_v53, %v709_v42 }
 0x25e   : > { %v1071_v44 = vpop.eup %1070  ;;  %v756_v45 = vmul.f32 1.442695, %v1412_v43 }
 0x25f   : > { %786 = vadd.xlane.f32.xlu1 %v1071_v44 }
 0x260   : > { %1072 = vpow2.f32 %v756_v45 }
 0x263   : > { %v711_v34 = vpop.xlane.xlu2 %710 }
 0x264   : > { %v1416_v46 = vsub.f32 %v1340_v56, %v711_v34 }
 0x266   : > { %v1073_v47 = vpop.eup %1072  ;;  %v758_v48 = vmul.f32 1.442695, %v1416_v46 }
 0x267   : > { %788 = vadd.xlane.f32.xlu2 %v1073_v47 }
 0x268   : > { %1074 = vpow2.f32 %v758_v48 }
 0x26b   : > { %v713_v49 = vpop.xlane.xlu0 %712 }
 0x26c   : > { %v1420_v50 = vsub.f32 %v1346_v59, %v713_v49 }
 0x26e   : > { %v1075_v51 = vpop.eup %1074  ;;  %v760_v52 = vmul.f32 1.442695, %v1420_v50 }
 0x26f   : > { %790 = vadd.xlane.f32.xlu0 %v1075_v51 }
 0x270   : > { %1076 = vpow2.f32 %v760_v52 }
 0x273   : > { %v715_v53 = vpop.xlane.xlu1 %714 }
 0x274   : > { %v1424_v54 = vsub.f32 %v1352_v62, %v715_v53 }
 0x276   : > { %v1077_v55 = vpop.eup %1076  ;;  %v762_v56 = vmul.f32 1.442695, %v1424_v54 }
 0x277   : > { %792 = vadd.xlane.f32.xlu1 %v1077_v55 }
 0x278   : > { %1078 = vpow2.f32 %v762_v56 }
 0x27b   : > { %v717_v57 = vpop.xlane.xlu2 %716 }
 0x27c   : > { %v1428_v58 = vsub.f32 %v1358_v1, %v717_v57 }
 0x27e   : > { %v1079_v59 = vpop.eup %1078  ;;  %v764_v60 = vmul.f32 1.442695, %v1428_v58 }
 0x27f   : > { %794 = vadd.xlane.f32.xlu2 %v1079_v59 }
 0x280   : > { %1080 = vpow2.f32 %v764_v60 }
 0x286   : > { %v1081_v61 = vpop.eup %1080 }
 0x287   : > { %796 = vadd.xlane.f32.xlu0 %v1081_v61 }
 0x289   : > { %v719_v63 = vpop.xlane.xlu0 %718 }
 0x28a   : > { %v1432_v62 = vsub.f32 %v1364_v4, %v719_v63 }
 0x28c   : > { %v766_v0 = vmul.f32 1.442695, %v1432_v62 }
 0x28e   : > { %1082 = vpow2.f32 %v766_v0 }
 0x291   : > { %v721_v2 = vpop.xlane.xlu1 %720 }
 0x292   : > { %v1436_v3 = vsub.f32 %v1370_v7, %v721_v2 }
 0x294   : > { %v1083_v1 = vpop.eup %1082  ;;  %v768_v5 = vmul.f32 1.442695, %v1436_v3 }
 0x295   : > { %798 = vadd.xlane.f32.xlu1 %v1083_v1 }
 0x296   : > { %1084 = vpow2.f32 %v768_v5 }
 0x299   : > { %v723_v6 = vpop.xlane.xlu2 %722 }
 0x29a   : > { %v1440_v8 = vsub.f32 %v1378_v12, %v723_v6 }
 0x29c   : > { %v1085_v9 = vpop.eup %1084  ;;  %v770_v4 = vmul.f32 1.442695, %v1440_v8 }
 0x29d   : > { %800 = vadd.xlane.f32.xlu2 %v1085_v9 }
 0x29e   : > { %1086 = vpow2.f32 %v770_v4 }
 0x2a1   : > { %v725_v10 = vpop.xlane.xlu0 %724 }
 0x2a2   : > { %v1444_v13 = vsub.f32 %v1387_v18, %v725_v10  ;;  %v775_v7 = vpop.xlane.xlu1 %774 }
 0x2a3   : > { %1088 = vlog2.f32 %v775_v7 }
 0x2a4   : > { %v1087_v14 = vpop.eup %1086  ;;  %v772_v15 = vmul.f32 1.442695, %v1444_v13 }
 0x2a5   : > { %802 = vadd.xlane.f32.xlu0 %v1087_v14 }
 0x2a6   : > { %1090 = vpow2.f32 %v772_v15 }
 0x2a9   : > { %v1089_v16 = vpop.eup %1088 }
 0x2aa   : > { %v807_v12 = vmul.f32 0.6931472, %v1089_v16  ;;  %v777_v19 = vpop.xlane.xlu2 %776 }
 0x2ab   : > { %1092 = vlog2.f32 %v777_v19 }
 0x2ac   : > { %v1091_v18 = vpop.eup %1090  ;;  %v838_v20 = vsub.f32 %v1374_v11, %v807_v12 }
 0x2ad   : > { %804 = vadd.xlane.f32.xlu1 %v1091_v18 }
 0x2ae   : > { %855 = vst.msk [vmem:[%s1452_s10] sm:$0xff] %vm854_vm2, %v838_v20 }
 0x2b1   : > { %v1093_v21 = vpop.eup %1092 }
 0x2b2   : > { %v809_v23 = vmul.f32 0.6931472, %v1093_v21  ;;  %v779_v24 = vpop.xlane.xlu0 %778 }
 0x2b3   : > { %1094 = vlog2.f32 %v779_v24 }
 0x2b4   : > { %v839_v25 = vsub.f32 %v1383_v17, %v809_v23 }
 0x2b6   : > { %856 = vst.msk [vmem:[%s1452_s10 + $0x8] sm:$0xff] %vm854_vm2, %v839_v25 }
 0x2b9   : > { %v1095_v27 = vpop.eup %1094 }
 0x2ba   : > { %v811_v28 = vmul.f32 0.6931472, %v1095_v27  ;;  %v781_v29 = vpop.xlane.xlu1 %780 }
 0x2bb   : > { %1096 = vlog2.f32 %v781_v29 }
 0x2bc   : > { %v840_v31 = vsub.f32 %v1392_v22, %v811_v28 }
 0x2be   : > { %857 = vst.msk [vmem:[%s1452_s10 + $0x10] sm:$0xff] %vm854_vm2, %v840_v31 }
 0x2c1   : > { %v1097_v11 = vpop.eup %1096 }
 0x2c2   : > { %v813_v32 = vmul.f32 0.6931472, %v1097_v11  ;;  %v783_v33 = vpop.xlane.xlu2 %782 }
 0x2c3   : > { %1098 = vlog2.f32 %v783_v33 }
 0x2c4   : > { %v841_v36 = vsub.f32 %v1396_v26, %v813_v32 }
 0x2c6   : > { %858 = vst.msk [vmem:[%s1452_s10 + $0x18] sm:$0xff] %vm854_vm2, %v841_v36 }
 0x2c9   : > { %v1099_v17 = vpop.eup %1098 }
 0x2ca   : > { %v815_v37 = vmul.f32 0.6931472, %v1099_v17  ;;  %v785_v38 = vpop.xlane.xlu0 %784 }
 0x2cb   : > { %1100 = vlog2.f32 %v785_v38 }
 0x2cc   : > { %v842_v40 = vsub.f32 %v1400_v30, %v815_v37 }
 0x2ce   : > { %859 = vst.msk [vmem:[%s1452_s10 + $0x20] sm:$0xff] %vm854_vm2, %v842_v40 }
 0x2d1   : > { %v1101_v22 = vpop.eup %1100 }
 0x2d2   : > { %v817_v41 = vmul.f32 0.6931472, %v1101_v22  ;;  %v787_v42 = vpop.xlane.xlu1 %786 }
 0x2d3   : > { %1102 = vlog2.f32 %v787_v42 }
 0x2d4   : > { %v843_v44 = vsub.f32 %v1404_v35, %v817_v41 }
 0x2d6   : > { %860 = vst.msk [vmem:[%s1452_s10 + $0x28] sm:$0xff] %vm854_vm2, %v843_v44 }
 0x2d9   : > { %v1103_v26 = vpop.eup %1102 }
 0x2da   : > { %v819_v45 = vmul.f32 0.6931472, %v1103_v26  ;;  %v789_v34 = vpop.xlane.xlu2 %788 }
 0x2db   : > { %1104 = vlog2.f32 %v789_v34 }
 0x2dc   : > { %v844_v47 = vsub.f32 %v1408_v39, %v819_v45 }
 0x2de   : > { %861 = vst.msk [vmem:[%s1452_s10 + $0x30] sm:$0xff] %vm854_vm2, %v844_v47 }
 0x2e1   : > { %v1105_v30 = vpop.eup %1104 }
 0x2e2   : > { %v821_v48 = vmul.f32 0.6931472, %v1105_v30  ;;  %v791_v49 = vpop.xlane.xlu0 %790 }
 0x2e3   : > { %1106 = vlog2.f32 %v791_v49 }
 0x2e4   : > { %v845_v51 = vsub.f32 %v1412_v43, %v821_v48 }
 0x2e6   : > { %862 = vst.msk [vmem:[%s1452_s10 + $0x38] sm:$0xff] %vm854_vm2, %v845_v51 }
 0x2e9   : > { %v1107_v35 = vpop.eup %1106 }
 0x2ea   : > { %v823_v52 = vmul.f32 0.6931472, %v1107_v35  ;;  %v793_v53 = vpop.xlane.xlu1 %792 }
 0x2eb   : > { %1108 = vlog2.f32 %v793_v53 }
 0x2ec   : > { %v846_v55 = vsub.f32 %v1416_v46, %v823_v52 }
 0x2ee   : > { %863 = vst.msk [vmem:[%s1452_s10 + $0x40] sm:$0xff] %vm854_vm2, %v846_v55 }
 0x2f1   : > { %v1109_v39 = vpop.eup %1108 }
 0x2f2   : > { %v825_v56 = vmul.f32 0.6931472, %v1109_v39  ;;  %v795_v57 = vpop.xlane.xlu2 %794 }
 0x2f3   : > { %1110 = vlog2.f32 %v795_v57 }
 0x2f4   : > { %v847_v59 = vsub.f32 %v1420_v50, %v825_v56 }
 0x2f6   : > { %864 = vst.msk [vmem:[%s1452_s10 + $0x48] sm:$0xff] %vm854_vm2, %v847_v59 }
 0x2f9   : > { %v1111_v43 = vpop.eup %1110 }
 0x2fa   : > { %v827_v60 = vmul.f32 0.6931472, %v1111_v43  ;;  %v797_v61 = vpop.xlane.xlu0 %796 }
 0x2fb   : > { %1112 = vlog2.f32 %v797_v61 }
 0x2fc   : > { %v848_v63 = vsub.f32 %v1424_v54, %v827_v60 }
 0x2fe   : > { %865 = vst.msk [vmem:[%s1452_s10 + $0x50] sm:$0xff] %vm854_vm2, %v848_v63 }
 0x301   : > { %v1113_v46 = vpop.eup %1112 }
 0x302   : > { %v829_v0 = vmul.f32 0.6931472, %v1113_v46 }
 0x304   : > { %v849_v2 = vsub.f32 %v1428_v58, %v829_v0 }
 0x306   : > { %866 = vst.msk [vmem:[%s1452_s10 + $0x58] sm:$0xff] %vm854_vm2, %v849_v2 }
 0x308   : > { %v799_v1 = vpop.xlane.xlu1 %798 }
 0x309   : > { %1114 = vlog2.f32 %v799_v1 }
 0x30f   : > { %v1115_v50 = vpop.eup %1114 }
 0x310   : > { %v831_v5 = vmul.f32 0.6931472, %v1115_v50  ;;  %v801_v6 = vpop.xlane.xlu2 %800 }
 0x311   : > { %1116 = vlog2.f32 %v801_v6 }
 0x312   : > { %v850_v9 = vsub.f32 %v1432_v62, %v831_v5 }
 0x314   : > { %867 = vst.msk [vmem:[%s1452_s10 + $0x60] sm:$0xff] %vm854_vm2, %v850_v9 }
 0x317   : > { %v1117_v54 = vpop.eup %1116 }
 0x318   : > { %v833_v4 = vmul.f32 0.6931472, %v1117_v54  ;;  %v803_v10 = vpop.xlane.xlu0 %802 }
 0x319   : > { %1118 = vlog2.f32 %v803_v10 }
 0x31a   : > { %v851_v58 = vsub.f32 %v1436_v3, %v833_v4 }
 0x31c   : > { %868 = vst.msk [vmem:[%s1452_s10 + $0x68] sm:$0xff] %vm854_vm2, %v851_v58 }
 0x31f   : > { %v1119_v7 = vpop.eup %1118 }
 0x320   : > { %v835_v14 = vmul.f32 0.6931472, %v1119_v7  ;;  %v805_v15 = vpop.xlane.xlu1 %804 }
 0x321   : > { %1120 = vlog2.f32 %v805_v15 }
 0x322   : > { %v852_v16 = vsub.f32 %v1440_v8, %v835_v14 }
 0x324   : > { %869 = vst.msk [vmem:[%s1452_s10 + $0x70] sm:$0xff] %vm854_vm2, %v852_v16 }
 0x327   : > { %v1121_v62 = vpop.eup %1120 }
 0x328   : > { %v837_v12 = vmul.f32 0.6931472, %v1121_v62 }
 0x32a   : > { %v853_v19 = vsub.f32 %v1444_v13, %v837_v12 }
 0x32c   : > { %870 = vst.msk [vmem:[%s1452_s10 + $0x78] sm:$0xff] %vm854_vm2, %v853_v19 }
 0x32d PF: > { %s17_s24 = sadd.s32 1, %s1128_s24  }
 0x32e   : > { %p14_p4 = scmp.ge.s32.totalorder %s17_s24, 4  }
 0x330   :  { %16 = sbr.rel (!%p14_p4) target bundleno = 1 (0x1), region = 78 }

</bundles_post_ra>
